<compile_context>
chip_gen: v5e
topology: v5e:2x2
jax: 0.10.0
libtpu: 0.0.40
codegen_flags: <defaults>
</compile_context>

<pallas_src>
import jax
import jax.numpy as jnp
from jax.experimental import pallas as pl
from jax.experimental.pallas import tpu as pltpu


def _round_up(x, m):
    return (x + m - 1) // m * m


def _vmem_capacity_bytes(default=64 << 20):
    """Physical VMEM per TensorCore; conservative (v7x-sized) default."""
    try:
        info = pltpu.get_tpu_info()
        cap = getattr(info, "vmem_capacity_bytes", None)
        if cap:
            return int(cap)
    except Exception:
        pass
    return default


def channel_attention_kernel(x_ref, w1t_ref, b1_ref, w2t_ref, b2_ref, o_ref):
    # x_ref block: (B_t, C, HW) in the input dtype; weight refs are tiny f32
    # arrays kept VMEM-resident across the grid (constant index_map).
    x = x_ref[...]                                            # (B_t, C, HW)
    bt, _, hw = x.shape

    # Global pooling over the spatial (lane) axis.  f32 accumulation via the
    # reduction dtype — no full-tile f32 copy of x is materialized.
    avg = jnp.sum(x, axis=-1, dtype=jnp.float32) * (1.0 / hw)  # (B_t, C)
    mx = jnp.max(x, axis=-1).astype(jnp.float32)               # (B_t, C)

    # Fused two-path MLP: stack [avg; max] so each linear layer is a single
    # matmul + bias + nonlinearity.  Row-wise only, so padded batch rows of a
    # ragged last block never leak into real rows.
    p = jnp.concatenate([avg, mx], axis=0)                     # (2*B_t, C)
    h = jnp.dot(p, w1t_ref[...], preferred_element_type=jnp.float32)
    h = jnp.maximum(h + b1_ref[...], 0.0)                      # (2*B_t, C_r)
    y = jnp.dot(h, w2t_ref[...], preferred_element_type=jnp.float32)
    y = jax.nn.sigmoid(y + b2_ref[...])                        # (2*B_t, C)
    attn = y[:bt] + y[bt:]                                     # (B_t, C)

    # Final scale in the input dtype (one extra rounding vs an all-f32 path
    # for sub-f32 inputs); attn broadcasts over the HW lane axis.
    o_ref[...] = (x * attn.astype(x.dtype)[:, :, None]).astype(o_ref.dtype)


def channel_attention(x_nchw, w1, b1, w2, b2, *, block_bytes_target=None):
    """x_nchw: (N, C, H, W); w1: (C_r, C), b1: (C_r,), w2: (C, C_r), b2: (C,)."""
    N, C, H, W = x_nchw.shape
    HW = H * W
    C_r = w1.shape[0]
    itemsize = jnp.dtype(x_nchw.dtype).itemsize

    # VMEM footprint of one image block using the tiled layout: HW pads to a
    # multiple of 128 lanes, C pads to the dtype's sublane multiple.
    sub = max(8, 32 // itemsize)              # 8 (f32), 16 (bf16), 32 (int8)
    per_image = _round_up(C, sub) * _round_up(HW, 128) * itemsize
    weight_bytes = (2 * C * C_r + C + C_r) * 4           # f32 params in VMEM

    # Generation-aware budgeting: v7x has 64 MiB VMEM/TC and 2 TCs; v5e/v6e
    # have 128 MiB and 1 TC.
    vmem_cap = _vmem_capacity_bytes()
    dual_tc = vmem_cap < (96 << 20)           # v7x-class heuristic
    usable = int(vmem_cap * 0.75)             # headroom for Mosaic scratch
    block_cap = max(1, (usable - weight_bytes) // 4)      # 2 in + 2 out bufs
    if block_bytes_target is None:
        block_bytes_target = min((6 << 20) if dual_tc else (8 << 20), block_cap)

    bt = int(max(1, min(N, block_bytes_target // per_image)))
    if per_image > block_cap:
        # TODO(synk): HW-split two-phase variant (pool over an 'arbitrary' HW
        # grid axis into scratch, then scale) for images too large to
        # double-buffer in VMEM; not needed at these sizes.
        bt = 1

    # Dual-TC chips: keep >=2 (preferably an even number of) grid steps so
    # both TensorCores get work; ragged last block is handled by masking.
    if dual_tc and N > 1:
        steps = max(2, pl.cdiv(N, bt))
        if steps % 2 == 1 and steps < N:
            steps += 1
        bt = pl.cdiv(N, min(steps, N))
    grid_n = pl.cdiv(N, bt)
    block_bytes = bt * per_image

    x3 = x_nchw.reshape(N, C, HW)             # pure reshape; HW stays on lanes
    # Hoist transposes / f32 casts of the tiny MLP params out of the kernel.
    w1t = jnp.asarray(w1, jnp.float32).T      # (C,   C_r)
    w2t = jnp.asarray(w2, jnp.float32).T      # (C_r, C)
    b1r = jnp.asarray(b1, jnp.float32).reshape(1, C_r)
    b2r = jnp.asarray(b2, jnp.float32).reshape(1, C)

    # Double-buffered input + output (default depth-2 pipelining) + weights
    # plus slack, clamped below the physical VMEM of this generation.
    need = 4 * block_bytes + weight_bytes + (4 << 20)
    vmem_limit = int(min(vmem_cap - (4 << 20), max(16 << 20, need)))

    cost = pl.CostEstimate(
        flops=3 * N * C * HW + 8 * N * C * C_r,
        transcendentals=2 * N * C,
        bytes_accessed=2 * N * C * HW * itemsize + weight_bytes,
    )

    out3 = pl.pallas_call(
        channel_attention_kernel,
        out_shape=jax.ShapeDtypeStruct((N, C, HW), x_nchw.dtype),
        grid_spec=pltpu.PrefetchScalarGridSpec(
            num_scalar_prefetch=0,
            grid=(grid_n,),
            in_specs=[
                pl.BlockSpec((bt, C, HW), lambda n: (n, 0, 0)),
                pl.BlockSpec((C, C_r), lambda n: (0, 0)),
                pl.BlockSpec((1, C_r), lambda n: (0, 0)),
                pl.BlockSpec((C_r, C), lambda n: (0, 0)),
                pl.BlockSpec((1, C), lambda n: (0, 0)),
            ],
            out_specs=pl.BlockSpec((bt, C, HW), lambda n: (n, 0, 0)),
        ),
        compiler_params=pltpu.CompilerParams(
            dimension_semantics=("parallel",),
            vmem_limit_bytes=vmem_limit,
        ),
        cost_estimate=cost,
    )(x3, w1t, b1r, w2t, b2r)
    return out3.reshape(N, C, H, W)


def reference(x_nchw, w1, b1, w2, b2):
    xf = x_nchw.astype(jnp.float32)
    avg = jnp.mean(xf, axis=(2, 3))                            # (N, C)
    mx = jnp.max(xf, axis=(2, 3))                              # (N, C)

    def mlp(p):                                                # (N, C)
        h = jnp.maximum(p @ w1.T + b1, 0.0)
        return jax.nn.sigmoid(h @ w2.T + b2)

    attn = mlp(avg) + mlp(mx)                                  # (N, C)
    return (xf * attn[:, :, None, None]).astype(x_nchw.dtype)


if __name__ == "__main__":
    # in_channels=64, reduction_ratio=16 -> hidden=4
    N, C, H, W = 2, 64, 16, 16
    C_r = C // 16

    key = jax.random.PRNGKey(0)
    kx, k1, k2, k3, k4 = jax.random.split(key, 5)
    x = jax.random.normal(kx, (N, C, H, W), dtype=jnp.float32)
    w1 = jax.random.normal(k1, (C_r, C), dtype=jnp.float32) * 0.1  # Linear(C, C_r).weight
    b1 = jax.random.normal(k2, (C_r,), dtype=jnp.float32) * 0.1
    w2 = jax.random.normal(k3, (C, C_r), dtype=jnp.float32) * 0.1  # Linear(C_r, C).weight
    b2 = jax.random.normal(k4, (C,), dtype=jnp.float32) * 0.1

    # f32 check (tight tolerance).
    out = channel_attention(x, w1, b1, w2, b2)
    out = jax.block_until_ready(out)
    ref = reference(x, w1, b1, w2, b2)
    assert out.shape == (N, C, H, W), out.shape
    assert jnp.allclose(out, ref, atol=1e-5, rtol=1e-5), float(
        jnp.max(jnp.abs(out - ref)))

    # bf16 check (loose tolerance: the kernel scales in the input dtype, one
    # extra rounding vs the all-f32 reference path).
    xb = x.astype(jnp.bfloat16)
    out_b = jax.block_until_ready(channel_attention(xb, w1, b1, w2, b2))
    ref_b = reference(xb, w1, b1, w2, b2).astype(jnp.float32)
    assert jnp.allclose(out_b.astype(jnp.float32), ref_b, atol=5e-2, rtol=5e-2)

    print("KERNEL_OK")
</pallas_src>

<mosaic_0001>
module attributes {stable_mosaic.version = 11 : i64} {
  func.func @channel_attention_kernel(%arg0: i32, %arg1: memref<1x64x256xf32, #tpu.memory_space<vmem>>, %arg2: memref<64x4xf32, #tpu.memory_space<vmem>>, %arg3: memref<1x4xf32, #tpu.memory_space<vmem>>, %arg4: memref<4x64xf32, #tpu.memory_space<vmem>>, %arg5: memref<1x64xf32, #tpu.memory_space<vmem>>, %arg6: memref<1x64x256xf32, #tpu.memory_space<vmem>>) attributes {dimension_semantics = [#tpu.dimension_semantics<parallel>], iteration_bounds = array<i64: 2>, scalar_prefetch = 0 : i64, scratch_operands = 0 : i64, tpu.core_type = #tpu.core_type<tc>, window_params = [{transform_indices = @transform_0, window_bounds = array<i64: 1, 64, 256>}, {pipeline_mode = #tpu.pipeline_mode<synchronous>, transform_indices = @transform_1, window_bounds = array<i64: 64, 4>}, {pipeline_mode = #tpu.pipeline_mode<synchronous>, transform_indices = @transform_2, window_bounds = array<i64: 1, 4>}, {pipeline_mode = #tpu.pipeline_mode<synchronous>, transform_indices = @transform_3, window_bounds = array<i64: 4, 64>}, {pipeline_mode = #tpu.pipeline_mode<synchronous>, transform_indices = @transform_4, window_bounds = array<i64: 1, 64>}, {transform_indices = @transform_5, window_bounds = array<i64: 1, 64, 256>}]} {
    %c0 = arith.constant 0 : index
    %c0_0 = arith.constant 0 : index
    %c0_1 = arith.constant 0 : index
    %0 = vector.load %arg1[%c0, %c0_0, %c0_1] : memref<1x64x256xf32, #tpu.memory_space<vmem>>, vector<1x64x256xf32>
    %cst = arith.constant dense<0.000000e+00> : vector<1x64xf32>
    %1 = vector.multi_reduction <add>, %0, %cst [2] : vector<1x64x256xf32> to vector<1x64xf32>
    %cst_2 = arith.constant 3.906250e-03 : f32
    %2 = vector.broadcast %cst_2 : f32 to vector<1x64xf32>
    %3 = arith.mulf %1, %2 : vector<1x64xf32>
    %cst_3 = arith.constant dense<0xFF800000> : vector<1x64xf32>
    %4 = vector.multi_reduction <maximumf>, %0, %cst_3 [2] : vector<1x64x256xf32> to vector<1x64xf32>
    %5 = tpu.concatenate %3, %4 in 0 : vector<1x64xf32>, vector<1x64xf32> -> vector<2x64xf32>
    %c0_4 = arith.constant 0 : index
    %c0_5 = arith.constant 0 : index
    %6 = vector.load %arg2[%c0_4, %c0_5] : memref<64x4xf32, #tpu.memory_space<vmem>>, vector<64x4xf32>
    %cst_6 = arith.constant dense<0.000000e+00> : vector<2x4xf32>
    %7 = tpu.matmul %5, %6, %cst_6 {dimension_numbers = #tpu.dot_dimension_numbers<[1], [0], [0], [1], [0, 0, 1, 1], [], []>} : vector<2x64xf32>, vector<64x4xf32>, vector<2x4xf32> -> vector<2x4xf32>
    %c0_7 = arith.constant 0 : index
    %c0_8 = arith.constant 0 : index
    %8 = vector.load %arg3[%c0_7, %c0_8] : memref<1x4xf32, #tpu.memory_space<vmem>>, vector<1x4xf32>
    %9 = vector.broadcast %8 : vector<1x4xf32> to vector<2x4xf32>
    %10 = arith.addf %7, %9 : vector<2x4xf32>
    %cst_9 = arith.constant 0.000000e+00 : f32
    %11 = vector.broadcast %cst_9 : f32 to vector<2x4xf32>
    %12 = arith.maximumf %10, %11 : vector<2x4xf32>
    %c0_10 = arith.constant 0 : index
    %c0_11 = arith.constant 0 : index
    %13 = vector.load %arg4[%c0_10, %c0_11] : memref<4x64xf32, #tpu.memory_space<vmem>>, vector<4x64xf32>
    %cst_12 = arith.constant dense<0.000000e+00> : vector<2x64xf32>
    %14 = tpu.matmul %12, %13, %cst_12 {dimension_numbers = #tpu.dot_dimension_numbers<[1], [0], [0], [1], [0, 0, 1, 1], [], []>} : vector<2x4xf32>, vector<4x64xf32>, vector<2x64xf32> -> vector<2x64xf32>
    %c0_13 = arith.constant 0 : index
    %c0_14 = arith.constant 0 : index
    %15 = vector.load %arg5[%c0_13, %c0_14] : memref<1x64xf32, #tpu.memory_space<vmem>>, vector<1x64xf32>
    %16 = vector.broadcast %15 : vector<1x64xf32> to vector<2x64xf32>
    %17 = arith.addf %14, %16 : vector<2x64xf32>
    %18 = arith.negf %17 : vector<2x64xf32>
    %19 = math.exp %18 : vector<2x64xf32>
    %cst_15 = arith.constant 1.000000e+00 : f32
    %20 = vector.broadcast %cst_15 : f32 to vector<2x64xf32>
    %21 = arith.addf %20, %19 : vector<2x64xf32>
    %22 = arith.divf %20, %21 : vector<2x64xf32>
    %23 = vector.extract_strided_slice %22 {offsets = [0, 0], sizes = [1, 64], strides = [1, 1]} : vector<2x64xf32> to vector<1x64xf32>
    %24 = vector.extract_strided_slice %22 {offsets = [1, 0], sizes = [1, 64], strides = [1, 1]} : vector<2x64xf32> to vector<1x64xf32>
    %25 = arith.addf %23, %24 : vector<1x64xf32>
    %26 = vector.shape_cast %25 : vector<1x64xf32> to vector<1x64x1xf32>
    %27 = vector.broadcast %26 : vector<1x64x1xf32> to vector<1x64x256xf32>
    %28 = arith.mulf %0, %27 : vector<1x64x256xf32>
    %c0_16 = arith.constant 0 : index
    %c0_17 = arith.constant 0 : index
    %c0_18 = arith.constant 0 : index
    %29 = vector.load %arg6[%c0_16, %c0_17, %c0_18] : memref<1x64x256xf32, #tpu.memory_space<vmem>>, vector<1x64x256xf32>
    tpu.vector_store %arg6[%c0_16, %c0_17, %c0_18], %28 {strides = array<i32>} : memref<1x64x256xf32, #tpu.memory_space<vmem>>, vector<1x64x256xf32>,
    return
  }
  func.func @transform_0(%arg0: i32) -> (i32, i32, i32) {
    %c0_i32 = arith.constant 0 : i32
    %c0_i32_0 = arith.constant 0 : i32
    %c0_i32_1 = arith.constant 0 : i32
    return %arg0, %c0_i32, %c0_i32_0 : i32, i32, i32
  }
  func.func @transform_1(%arg0: i32) -> (i32, i32) {
    %c0_i32 = arith.constant 0 : i32
    %c0_i32_0 = arith.constant 0 : i32
    %c0_i32_1 = arith.constant 0 : i32
    return %c0_i32, %c0_i32_0 : i32, i32
  }
  func.func @transform_2(%arg0: i32) -> (i32, i32) {
    %c0_i32 = arith.constant 0 : i32
    %c0_i32_0 = arith.constant 0 : i32
    %c0_i32_1 = arith.constant 0 : i32
    return %c0_i32, %c0_i32_0 : i32, i32
  }
  func.func @transform_3(%arg0: i32) -> (i32, i32) {
    %c0_i32 = arith.constant 0 : i32
    %c0_i32_0 = arith.constant 0 : i32
    %c0_i32_1 = arith.constant 0 : i32
    return %c0_i32, %c0_i32_0 : i32, i32
  }
  func.func @transform_4(%arg0: i32) -> (i32, i32) {
    %c0_i32 = arith.constant 0 : i32
    %c0_i32_0 = arith.constant 0 : i32
    %c0_i32_1 = arith.constant 0 : i32
    return %c0_i32, %c0_i32_0 : i32, i32
  }
  func.func @transform_5(%arg0: i32) -> (i32, i32, i32) {
    %c0_i32 = arith.constant 0 : i32
    %c0_i32_0 = arith.constant 0 : i32
    %c0_i32_1 = arith.constant 0 : i32
    return %arg0, %c0_i32, %c0_i32_0 : i32, i32, i32
  }
}

</mosaic_0001>

<bundles_post_ra>
// kernel: tpu_custom_call.1
= control target key start
LH: loop header
LB: loop body
LE: loop exit
PB: predicated region body
PF: predicated region fallthrough
CT: control target
= control target key end

     0   :  { %10 = vsyncpa [#allocation3], 0  ;;  %s1154_s0 = inlined_call_operand.hbm [shape: f32[2,64,256], index: 0, kind: input, shape index: {}]   ;;  %s1155_s1 = inlined_call_operand.vmem [shape: f32[64,4], index: 1, kind: input, shape index: {}]   ;;  %s1156_s2 = inlined_call_operand.vmem [shape: f32[1,4], index: 2, kind: input, shape index: {}]   ;;  %s1157_s3 = inlined_call_operand.vmem [shape: f32[4,64], index: 3, kind: input, shape index: {}]   ;;  %s1158_s4 = inlined_call_operand.vmem [shape: f32[1,64], index: 4, kind: input, shape index: {}]   ;;  %s1159_s5 = inlined_call_operand.hbm [shape: f32[2,64,256], index: 5, kind: output, shape index: {}]  }
   0x1   :  { %12 = vsyncpa [#allocation3 + $0x1], 0 }
   0x2   :  { %13 = vsyncpa [#allocation4], 0 }
   0x3   :  { %15 = vsyncpa [#allocation4 + $0x1], 0  ;;  %s863_s18 = smov 0   ;;  %s865_s19 = smov 0  }
   0x4   :  { %s867_s20 = smov 0   ;;  %s869_s21 = smov 0  }
   0x5 LB: > { %s884_s22 = sadd.s32 4294967295, %s827_s21   ;;  %s646_s23 = sadd.s32 4294967294, %s827_s21   ;;  %s827_s21 = sphi %s869_s21, %s1169_s21   ;;  %s823_s20 = sphi %s867_s20, %s1168_s20   ;;  %s819_s19 = sphi %s865_s19, %s1167_s19   ;;  %s815_s18 = sphi %s863_s18, %s1166_s18  }
   0x6   : > { %s888_s24 = sadd.s32 1, %s827_s21   ;;  %s28_s25 = sadd.s32 1, %s823_s20 }
   0x7   : > { %s25_s26 = ssub.s32 %s827_s21, %s888_s24  ;;  %p35_p0 = scmp.ne.s32.totalorder %s823_s20, %s819_s19 }
   0x8   : > { %p26_p1 = scmp.eq.s32.totalorder %s25_s26, 0  ;;  %p36_p2 = scmp.eq.s32.totalorder %s827_s21, 0 }
   0x9   : > { %p41_p3 = scmp.ne.s32.totalorder %s819_s19, %s815_s18  ;;  %p42_p4 = scmp.eq.s32.totalorder %s884_s22, 0 }
   0xa   : > { %s900_s27 = scalar_select %p26_p1, %s823_s20, %s28_s25  }
   0xb   : > { %p902_p5 = por %p36_p2, %p35_p0  ;;  %p906_p6 = por %p42_p4, %p41_p3 }
   0xc   : > { %p149_p7 = scmp.eq.s32.totalorder %s884_s22, 1  ;;  %p155_p8 = scmp.eq.s32.totalorder %s646_s23, 1 }
   0xd   : > { %p678_p10 = scmp.lt.s32.totalorder %s827_s21, 2  ;;  %s187_s7 = sand.u32 1, %s823_s20  }
   0xe   : > { %p913_p11 = por %p149_p7, %p35_p0  ;;  %p917_p12 = por %p155_p8, %p41_p3 }
   0xf   : > { %s664_s8 = sshll.u32 %s827_s21, 7  ;;  %s649_s9 = sshll.u32 %s187_s7, 7 }
  0x10   : > { %s196_s12 = scalar_lea.hbm %s1154_s0, %s664_s8  ;;  %s191_s14 = scalar_lea.vmem [#allocation2], %s649_s9 }
  0x11   : > { %s197_s13 = sshll.u32 %s196_s12, 4  ;;  %s199_s15 = sshll.u32 %s191_s14, 4  ;;  %s198_s13 = int_to_ptr.hbm [resolvable:$true] %s197_s13  ;;  %s200_s15 = int_to_ptr.vmem [resolvable:$true] %s199_s15 }
  0x12   : > { %p928_p13 = pnand %p678_p10, %p902_p5  ;;  %p652_p0 = scmp.ge.s32.totalorder %s827_s21, 1 }
  0x13   : > { %p207_p1 = scmp.lt.s32.totalorder %s827_s21, 3  ;;  %s188_s17 = scalar_lea.sflag [#allocation3], %s187_s7 }
  0x14   : > { %s731_s23 = sshra.s32 %s198_s13, 4  ;;  %p735_p3 = pneg %p928_p13  ;;  %s732_s23 = int_to_ptr.hbm [resolvable:$true] %s731_s23 }
  0x15   : > { %s733_s25 = scalar_lea.hbm %s732_s23, 128  ;;  %s738_s28 = scalar_lea.hbm %s1154_s0, 256 }
  0x16   : > { %p734_p2 = scmp.ne.s32.totalorder %s732_s23, %s733_s25  ;;  %p739_p5 = scmp.lt.s32.totalorder %s732_s23, %s1154_s0 }
  0x17   : > { %p740_p8 = scmp.lt.s32.totalorder %s738_s28, %s733_s25 }
  0x18   : > { %p736_p4 = pnand %p735_p3, %p734_p2 }
  0x19   : > { %p741_p10 = por %p740_p8, %p739_p5 }
  0x1a   : > { %p737_p7 = pneg %p736_p4 }
  0x1c   : > { %p742_p9 = pnand %p741_p10, %p737_p7 }
  0x1e   : > { %745 = shalt.err (!%p742_p9)
}
  0x1f   : > { %s829_s7 = smov 256   ;;  %s830_s11 = smov 16  }
  0x20   : > { %673 = dma.hbm_to_vmem [thread:$0]  (!%p928_p13), %s198_s13, 2048, %s200_s15, %s188_s17, %s829_s7, %s829_s7, %s830_s11  }
  0x21   : > { %p208_p2 = pnand %p652_p0, %p207_p1 }
  0x22   : > { %s949_s12 = sand.u32 (!%p208_p2), 1, %s819_s19  }
  0x23   : > { %211 = sbr.rel (%p208_p2) target bundleno = 652 (0x28c), region = 40  ;;  %s653_s14 = sshll.u32 (!%p208_p2), %s949_s12, 7 }
  0x24   : > { %s214_s23 = scalar_lea.sflag (!%p208_p2), [#allocation3], %s949_s12  ;;  %s955_s25 = scalar_lea.vmem (!%p208_p2), [#allocation2], %s653_s14 }
  0x28   : > { %806 = dma.done.wait (%p906_p6), %s214_s23, 2048  }
  0x29   : > { %808 = vsyncadd (%p906_p6), %s214_s23, 4294965248  ;;  %v962_v0 = vld [vmem:[%s955_s25 + $0x20] sm:$0xff]  ;;  %v965_v1 = vld [vmem:[%s955_s25 + $0x28] sm:$0xff]  ;;  %v325_v49 = vlaneseq  ;;  %vm330_vm0 = vcmask 130112   ;;  %vm334_vm1 = vcmask 195712   ;;  %vm338_vm2 = vcmask 261312  }
  0x2a   : > { %v968_v2 = vld [vmem:[%s955_s25] sm:$0xff]  ;;  %v267_v3 = vadd.f32 %v965_v1, %v962_v0  ;;  %v973_v4 = vld [vmem:[%s955_s25 + $0x8] sm:$0xff]  ;;  %v980_v7 = vld [vmem:[%s955_s25 + $0x30] sm:$0xff]  ;;  %v299_v18 = vmax.f32 %v962_v0, %v965_v1  ;;  %vm342_vm3 = vcmask 326912   ;;  %vm346_vm4 = vcmask 392512   ;;  %s1088_s9 = scalar_lea.vmem [#allocation5], %s653_s14 }
  0x2b   : > { %v293_v5 = vmax.f32 %v968_v2, %v973_v4  ;;  %v261_v6 = vadd.f32 %v973_v4, %v968_v2  ;;  %v983_v8 = vld [vmem:[%s955_s25 + $0x38] sm:$0xff]  ;;  %v986_v9 = vld [vmem:[%s955_s25 + $0x10] sm:$0xff]  ;;  %v998_v14 = vld [vmem:[%s955_s25 + $0x40] sm:$0xff]  ;;  %v326_v50 = vand.u32 127, %v325_v49  ;;  %vm350_vm5 = vcmask 458112   ;;  %s665_s14 = sshll.u32 %s884_s22, 7 }
  0x2c   : > { %268 = vadd.xlane.f32.xlu1 %v267_v3  ;;  %v989_v10 = vld [vmem:[%s955_s25 + $0x18] sm:$0xff]  ;;  %v270_v11 = vadd.f32 %v983_v8, %v980_v7  ;;  %v1001_v15 = vld [vmem:[%s955_s25 + $0x48] sm:$0xff]  ;;  %v1004_v16 = vld [vmem:[%s955_s25 + $0x50] sm:$0xff]  ;;  %v302_v24 = vmax.f32 %v980_v7, %v983_v8  ;;  %vm354_vm6 = vcmask 523712   ;;  %vm381_vm7 = vcmask 1040384   ;;  %s569_s11 = scalar_lea.hbm %s1159_s5, %s665_s14  ;;  %s570_s23 = sshll.u32 %s1088_s9, 4  ;;  %s571_s23 = int_to_ptr.vmem [resolvable:$true] %s570_s23 }
  0x2d   : > { %294 = vmax.xlane.f32.xlu2 %v293_v5  ;;  %262 = vadd.xlane.f32.xlu0 %v261_v6  ;;  %v296_v12 = vmax.f32 %v986_v9, %v989_v10  ;;  %v264_v13 = vadd.f32 %v989_v10, %v986_v9  ;;  %v1007_v17 = vld [vmem:[%s955_s25 + $0x58] sm:$0xff]  ;;  %v273_v19 = vadd.f32 %v1001_v15, %v998_v14  ;;  %v1016_v21 = vld [vmem:[%s955_s25 + $0x60] sm:$0xff]  ;;  %v1019_v22 = vld [vmem:[%s955_s25 + $0x68] sm:$0xff]  ;;  %v328_v54 = vadd.s32 4294967288, %v326_v50  ;;  %s558_s29 = scalar_lea.sflag [#allocation4], %s949_s12  ;;  %s781_s17 = scalar_lea.hbm %s1159_s5, 256 }
  0x2e   : > { %v276_v20 = vadd.f32 %v1007_v17, %v1004_v16  ;;  %v279_v23 = vadd.f32 %v1019_v22, %v1016_v21  ;;  %v305_v25 = vmax.f32 %v998_v14, %v1001_v15  ;;  %v1028_v26 = vld [vmem:[%s955_s25 + $0x70] sm:$0xff]  ;;  %v1031_v27 = vld [vmem:[%s955_s25 + $0x78] sm:$0xff]  ;;  %v308_v28 = vmax.f32 %v1004_v16, %v1007_v17  ;;  %v388_v37 = vld [vmem:[%s1155_s1 + $0x28] sm:$0xff]  ;;  %s572_s25 = sshll.u32 %s569_s11, 4  ;;  %s573_s25 = int_to_ptr.hbm [resolvable:$true] %s572_s25 }
  0x2f   : > { %v282_v29 = vadd.f32 %v1031_v27, %v1028_v26  ;;  %v311_v30 = vmax.f32 %v1016_v21, %v1019_v22  ;;  %v314_v31 = vmax.f32 %v1028_v26, %v1031_v27  ;;  %v390_v32 = vld [vmem:[%s1155_s1 + $0x38] sm:$0xff]  ;;  %v389_v33 = vld [vmem:[%s1155_s1 + $0x30] sm:$0xff]  ;;  %v387_v38 = vld [vmem:[%s1155_s1 + $0x20] sm:$0xff]  ;;  %v332_v58 = vadd.s32 4294967280, %v326_v50  ;;  %s775_s22 = sshra.s32 %s573_s25, 4  ;;  %s776_s22 = int_to_ptr.hbm [resolvable:$true] %s775_s22 }
  0x30   : > { %407 = vmatpush.msra.mxu0 %v390_v32  ;;  %v386_v39 = vld [vmem:[%s1155_s1 + $0x18] sm:$0xff]  ;;  %v385_v40 = vld [vmem:[%s1155_s1 + $0x10] sm:$0xff]  ;;  %v384_v44 = vld [vmem:[%s1155_s1 + $0x8] sm:$0xff]  ;;  %v336_v61 = vadd.s32 4294967272, %v326_v50  ;;  %vm395_vm8 = vcmask 523264   ;;  %vm429_vm9 = vcmask 1043456   ;;  %p782_p0 = scmp.lt.s32.totalorder %s776_s22, %s1159_s5 }
  0x31   : > { %v383_v45 = vld [vmem:[%s1155_s1] sm:$0xff]  ;;  %vm425_vm10 = vcmask 31744   ;;  %s777_s13 = scalar_lea.hbm %s776_s22, 128 }
  0x32   : > { %408 = vmatpush.msra.mxu0 %v389_v33  ;;  %p778_p6 = scmp.ne.s32.totalorder %s776_s22, %s777_s13  ;;  %p783_p1 = scmp.lt.s32.totalorder %s781_s17, %s777_s13 }
  0x34   : > { %271 = vadd.xlane.f32.xlu1 %v270_v11  ;;  %409 = vmatpush.msra.mxu0 %v388_v37  ;;  %v340_v11 = vadd.s32 4294967264, %v326_v50  ;;  %v352_v37 = vadd.s32 4294967240, %v326_v50  ;;  %p779_p9 = pnand %p778_p6, %p913_p11  ;;  %p784_p3 = por %p783_p1, %p782_p0 }
  0x35   : > { %297 = vmax.xlane.f32.xlu2 %v296_v12  ;;  %265 = vadd.xlane.f32.xlu0 %v264_v13 }
  0x36   : > { %410 = vmatpush.msra.mxu0 %v387_v38  ;;  %p780_p13 = pneg %p779_p9 }
  0x38   : > { %411 = vmatpush.msra.mxu0 %v386_v39  ;;  %p785_p4 = pnand %p784_p3, %p780_p13 }
  0x3a   : > { %412 = vmatpush.msra.mxu0 %v385_v40 }
  0x3c   : > { %300 = vmax.xlane.f32.xlu1 %v299_v18  ;;  %413 = vmatpush.msra.mxu0 %v384_v44 }
  0x3d   : > { %274 = vadd.xlane.f32.xlu0 %v273_v19  ;;  %277 = vadd.xlane.f32.xlu2 %v276_v20  ;;  %v344_v19 = vadd.s32 4294967256, %v326_v50  ;;  %v348_v20 = vadd.s32 4294967248, %v326_v50 }
  0x3e   : > { %414 = vmatpush.msra.mxu0 %v383_v45 }
  0x44   : > { %280 = vadd.xlane.f32.xlu1 %v279_v23 }
  0x45   : > { %303 = vmax.xlane.f32.xlu0 %v302_v24  ;;  %306 = vmax.xlane.f32.xlu2 %v305_v25 }
  0x4c   : > { %309 = vmax.xlane.f32.xlu1 %v308_v28 }
  0x4d   : > { %283 = vadd.xlane.f32.xlu0 %v282_v29  ;;  %312 = vmax.xlane.f32.xlu2 %v311_v30 }
  0x55   : > { %315 = vmax.xlane.f32.xlu0 %v314_v31 }
  0x9f   : > { %v269_v34 = vpop.xlane.xlu1 %268 }
  0xa0   : > { %v295_v35 = vpop.xlane.xlu2 %294  ;;  %v263_v36 = vpop.xlane.xlu0 %262  ;;  %v287_v59 = vmul.f32 0.00390625, %v269_v34 }
  0xa1   : > { %v285_v53 = vmul.f32 0.00390625, %v263_v36  ;;  %v365_v62 = vperm.slane %v295_v35, %v326_v50 }
  0xa2   : > { %v333_v13 = vperm.slane %v287_v59, %v332_v58 }
  0xa3   : > { %v327_v60 = vperm.slane %v285_v53, %v326_v50 }
  0xa7   : > { %v272_v41 = vpop.xlane.xlu1 %271 }
  0xa8   : > { %v298_v42 = vpop.xlane.xlu2 %297  ;;  %v266_v43 = vpop.xlane.xlu0 %265  ;;  %v288_v63 = vmul.f32 0.00390625, %v272_v41 }
  0xa9   : > { %v286_v51 = vmul.f32 0.00390625, %v266_v43  ;;  %v366_v3 = vperm.slane %v298_v42, %v328_v54 }
  0xaa   : > { %v337_v25 = vperm.slane %v288_v63, %v336_v61 }
  0xab   : > { %v329_v57 = vperm.slane %v286_v51, %v328_v54  ;;  %v367_v28 = vsel %vm330_vm0, %v366_v3, %v365_v62  ;;  %v478_v62 = vshrl.u32 %v325_v49, 7 }
  0xad   : > { %v331_v5 = vsel %vm330_vm0, %v329_v57, %v327_v60  ;;  %v420_v57 = vld [vmem:[%s1157_s3] sm:$0xf]  ;;  %716 = vset.pattern.permute.xlu1 %v478_v62  ;;  %v491_v63 = vadd.s32 16, %v478_v62  ;;  %v485_v3 = vadd.s32 8, %v478_v62 }
  0xae   : > { %v335_v29 = vsel %vm334_vm1, %v333_v13, %v331_v5  ;;  %656 = vmatpush.msk.msra.mxu1 %vm429_vm9, %v420_v57  ;;  %v726_v5 = vld [vmem:[%s1158_s4] ss:$0 sm:$0xff] }
  0xaf   : > { %v301_v46 = vpop.xlane.xlu1 %300  ;;  %v339_v40 = vsel %vm338_vm2, %v337_v25, %v335_v29  ;;  %718 = vset.pattern.permute.xlu0 %v491_v63  ;;  %717 = vset.pattern.permute.xlu2 %v485_v3 }
  0xb0   : > { %v275_v47 = vpop.xlane.xlu0 %274  ;;  %v278_v48 = vpop.xlane.xlu2 %277  ;;  %v368_v6 = vperm.slane %v301_v46, %v332_v58  ;;  %v725_v58 = vld [vmem:[%s1156_s2] ss:$0 sm:$0xff] }
  0xb1   : > { %v289_v12 = vmul.f32 0.00390625, %v275_v47  ;;  %v290_v30 = vmul.f32 0.00390625, %v278_v48 }
  0xb2   : > { %v369_v31 = vsel %vm334_vm1, %v368_v6, %v367_v28 }
  0xb3   : > { %v341_v32 = vperm.slane %v289_v12, %v340_v11  ;;  %v345_v41 = vperm.slane %v290_v30, %v344_v19 }
  0xb5   : > { %v343_v42 = vsel %vm342_vm3, %v341_v32, %v339_v40 }
  0xb6   : > { %v347_v51 = vsel %vm346_vm4, %v345_v41, %v343_v42 }
  0xb7   : > { %v281_v52 = vpop.xlane.xlu1 %280 }
  0xb8   : > { %v304_v55 = vpop.xlane.xlu0 %303  ;;  %v307_v56 = vpop.xlane.xlu2 %306  ;;  %v291_v33 = vmul.f32 0.00390625, %v281_v52 }
  0xb9   : > { %v370_v18 = vperm.slane %v304_v55, %v336_v61  ;;  %v372_v34 = vperm.slane %v307_v56, %v340_v11 }
  0xba   : > { %v349_v43 = vperm.slane %v291_v33, %v348_v20 }
  0xbb   : > { %v371_v35 = vsel %vm338_vm2, %v370_v18, %v369_v31 }
  0xbc   : > { %v373_v44 = vsel %vm342_vm3, %v372_v34, %v371_v35  ;;  %v351_v53 = vsel %vm350_vm5, %v349_v43, %v347_v51  ;;  %v497_v35 = vadd.s32 24, %v478_v62 }
  0xbf   : > { %v310_v23 = vpop.xlane.xlu1 %309 }
  0xc0   : > { %v284_v24 = vpop.xlane.xlu0 %283  ;;  %v374_v36 = vperm.slane %v310_v23, %v344_v19  ;;  %v313_v39 = vpop.xlane.xlu2 %312 }
  0xc1   : > { %v292_v38 = vmul.f32 0.00390625, %v284_v24  ;;  %v376_v45 = vperm.slane %v313_v39, %v348_v20  ;;  %v515_v39 = vadd.s32 48, %v478_v62 }
  0xc2   : > { %v375_v46 = vsel %vm346_vm4, %v374_v36, %v373_v44  ;;  %v503_v36 = vadd.s32 32, %v478_v62 }
  0xc3   : > { %v353_v47 = vperm.slane %v292_v38, %v352_v37  ;;  %v377_v50 = vsel %vm350_vm5, %v376_v45, %v375_v46  ;;  %v509_v38 = vadd.s32 40, %v478_v62 }
  0xc5   : > { %v355_v54 = vsel %vm354_vm6, %v353_v47, %v351_v53 }
  0xc8   : > { %v316_v48 = vpop.xlane.xlu0 %315 }
  0xc9   : > { %v378_v52 = vperm.slane %v316_v48, %v352_v37  ;;  %v521_v37 = vadd.s32 56, %v478_v62 }
  0xcb   : > { %v379_v55 = vsel %vm354_vm6, %v378_v52, %v377_v50 }
  0xcc   : > { %v382_v56 = vsel %vm381_vm7, %v355_v54, %v379_v55 }
  0xcd   : > { %655 = vmatmul.msk.f32.vlgmr.msra.gmra.mxu0 %vm395_vm8, %v382_v56 }
 0x14a   : > { %v416_v59 = vpop.f32.mrf.mxu0 }
 0x14b   : > { %v417_v60 = vadd.f32 %v725_v58, %v416_v59 }
 0x14d   : > { %v419_v61 = vmax.f32 %v417_v60, 0.0 }
 0x14f   : > { %657 = vmatmul.msk.f32.vlgmr.msra.gmra.mxu1 %vm425_vm10, %v419_v61 }
 0x1cc   : > { %v450_v6 = vpop.f32.mrf.mxu1 }
 0x1cd   : > { %v451_v11 = vadd.f32 %v726_v5, %v450_v6 }
 0x1cf   : > { %v658_v12 = vmul.f32 -1.442695, %v451_v11 }
 0x1d1   : > { %727 = vpow2.f32 %v658_v12 }
 0x1d7   : > { %v728_v13 = vpop.eup %727 }
 0x1d8   : > { %v456_v18 = vadd.f32 1.0, %v728_v13 }
 0x1da   : > { %729 = vrcp.f32 %v456_v18  ;;  %v468_v49 = vand.u32 2147483648, %v456_v18  ;;  %v466_v25 = vand.u32 2147483647, %v456_v18  ;;  %vm462_vm12 = vweird.f32 %v456_v18 }
 0x1dc   : > { %v469_v29 = vor.u32 1.1754944e-38, %v468_v49  ;;  %vm467_vm14 = vcmp.eq.f32.partialorder %v466_v25, 8.507059e+37 }
 0x1e0   : > { %v730_v19 = vpop.eup %729 }
 0x1e1   : > { %v458_v20 = vmul.f32 %v730_v19, %v456_v18  ;;  %vm463_vm11 = vweird.f32 %v730_v19 }
 0x1e2   : > { %vm464_vm13 = vmor %vm462_vm12, %vm463_vm11 }
 0x1e3   : > { %v459_v23 = vsub.f32 1.0, %v458_v20 }
 0x1e5   : > { %v460_v24 = vmul.f32 %v730_v19, %v459_v23 }
 0x1e7   : > { %v461_v28 = vadd.f32 %v730_v19, %v460_v24 }
 0x1e9   : > { %v465_v30 = vsel %vm464_vm13, %v730_v19, %v461_v28 }
 0x1ea   : > { %v470_v31 = vsel %vm467_vm14, %v469_v29, %v465_v30 }
 0x1eb   : > { %v473_v32 = vrot.slane %v470_v31, 1 }
 0x1ed   : > { %v475_v33 = vadd.f32 %v473_v32, %v470_v31 }
 0x1ef   : > { %v476_v34 = vperm.slane %v475_v33, 0 }
 0x1f1   : > { %493 = vperm.xlu0 %718, %v476_v34   ;;  %487 = vperm.xlu2 %717, %v476_v34  }
 0x1f2   : > { %481 = vperm.xlu1 %716, %v476_v34  }
 0x1f9   : > { %719 = vset.pattern.permute.xlu2 %v497_v35  ;;  %724 = vset.pattern.permute.xlu0 %v521_v37 }
 0x1fa   : > { %720 = vset.pattern.permute.xlu1 %v503_v36 }
 0x201   : > { %499 = vperm.xlu2 %719, %v476_v34  }
 0x202   : > { %505 = vperm.xlu1 %720, %v476_v34  }
 0x209   : > { %721 = vset.pattern.permute.xlu2 %v509_v38 }
 0x20a   : > { %722 = vset.pattern.permute.xlu1 %v515_v39 }
 0x211   : > { %511 = vperm.xlu2 %721, %v476_v34  }
 0x212   : > { %517 = vperm.xlu1 %722, %v476_v34  }
 0x219   : > { %723 = vset.pattern.permute.xlu2 %v521_v37 }
 0x221   : > { %523 = vperm.xlu2 %723, %v476_v34  }
 0x24b   : > { %v488_v40 = vpop.permute.xlu2 %487 }
 0x24c   : > { %v527_v41 = vmul.f32 %v488_v40, %v986_v9  ;;  %v528_v42 = vmul.f32 %v488_v40, %v989_v10 }
 0x24e   : > { %543 = vst [vmem:[%s1088_s9 + $0x10] sm:$0xff] %v527_v41 }
 0x24f   : > { %544 = vst [vmem:[%s1088_s9 + $0x18] sm:$0xff] %v528_v42 }
 0x25b   : > { %v500_v43 = vpop.permute.xlu2 %499 }
 0x25c   : > { %v531_v44 = vmul.f32 %v500_v43, %v980_v7  ;;  %v532_v9 = vmul.f32 %v500_v43, %v983_v8 }
 0x25e   : > { %547 = vst [vmem:[%s1088_s9 + $0x30] sm:$0xff] %v531_v44 }
 0x25f   : > { %548 = vst [vmem:[%s1088_s9 + $0x38] sm:$0xff] %v532_v9 }
 0x263   : > { %v494_v10 = vpop.permute.xlu0 %493 }
 0x264   : > { %v529_v45 = vmul.f32 %v494_v10, %v962_v0  ;;  %v530_v46 = vmul.f32 %v494_v10, %v965_v1  ;;  %v482_v47 = vpop.permute.xlu1 %481 }
 0x265   : > { %v525_v48 = vmul.f32 %v482_v47, %v968_v2  ;;  %v526_v51 = vmul.f32 %v482_v47, %v973_v4 }
 0x266   : > { %545 = vst [vmem:[%s1088_s9 + $0x20] sm:$0xff] %v529_v45 }
 0x267   : > { %546 = vst [vmem:[%s1088_s9 + $0x28] sm:$0xff] %v530_v46 }
 0x268   : > { %541 = vst [vmem:[%s1088_s9] sm:$0xff] %v525_v48 }
 0x269   : > { %542 = vst [vmem:[%s1088_s9 + $0x8] sm:$0xff] %v526_v51 }
 0x26b   : > { %v512_v7 = vpop.permute.xlu2 %511 }
 0x26c   : > { %v535_v8 = vmul.f32 %v512_v7, %v1004_v16  ;;  %v536_v0 = vmul.f32 %v512_v7, %v1007_v17 }
 0x26e   : > { %551 = vst [vmem:[%s1088_s9 + $0x50] sm:$0xff] %v535_v8 }
 0x26f   : > { %552 = vst [vmem:[%s1088_s9 + $0x58] sm:$0xff] %v536_v0 }
 0x274   : > { %v506_v1 = vpop.permute.xlu1 %505 }
 0x275   : > { %v533_v2 = vmul.f32 %v506_v1, %v998_v14  ;;  %v534_v4 = vmul.f32 %v506_v1, %v1001_v15 }
 0x277   : > { %549 = vst [vmem:[%s1088_s9 + $0x40] sm:$0xff] %v533_v2 }
 0x278   : > { %550 = vst [vmem:[%s1088_s9 + $0x48] sm:$0xff] %v534_v4 }
 0x27b   : > { %v524_v52 = vpop.permute.xlu2 %523 }
 0x27c   : > { %v539_v50 = vmul.f32 %v524_v52, %v1028_v26  ;;  %v540_v16 = vmul.f32 %v524_v52, %v1031_v27 }
 0x27e   : > { %555 = vst [vmem:[%s1088_s9 + $0x70] sm:$0xff] %v539_v50 }
 0x27f   : > { %556 = vst [vmem:[%s1088_s9 + $0x78] sm:$0xff] %v540_v16 }
 0x284   : > { %v518_v14 = vpop.permute.xlu1 %517 }
 0x285   : > { %v537_v15 = vmul.f32 %v518_v14, %v1016_v21  ;;  %v538_v17 = vmul.f32 %v518_v14, %v1019_v22 }
 0x287   : > { %553 = vst [vmem:[%s1088_s9 + $0x60] sm:$0xff] %v537_v15 }
 0x288   : > { %554 = vst [vmem:[%s1088_s9 + $0x68] sm:$0xff] %v538_v17 }
 0x289   : > { %788 = shalt.err (!%p785_p4)
}
 0x28a   : > { %s831_s12 = smov 256   ;;  %s832_s28 = smov 16  }
 0x28b   : > { %668 = dma.vmem_to_hbm [thread:$0]  (%p913_p11), %s571_s23, 2048, %s573_s25, %s558_s29, %s831_s12, %s831_s12, %s832_s28  }
 0x28c PF: > { %s587_s9 = sand.u32 1, %s815_s18   ;;  %p1165_p7 = scmp.ge.s32.totalorder %s827_s21, 2 }
 0x28d   : > { %s588_s14 = scalar_lea.sflag [#allocation4], %s587_s9 }
 0x28e   : > { %p675_p5 = pnand %p1165_p7, %p917_p12 }
 0x290   : > { %p676_p8 = pneg %p675_p5 }
 0x292   : > { %810 = dma.done.wait (%p676_p8), %s588_s14, 2048  }
 0x293   : > { %812 = vsyncadd (%p676_p8), %s588_s14, 4294965248  ;;  %p18_p10 = scmp.ge.s32.totalorder %s888_s24, 4   ;;  %s1166_s18 = smov %s819_s19 }
 0x294   : > { %s1167_s19 = smov %s823_s20  ;;  %s1168_s20 = smov %s900_s27 }
 0x295   : > { %s1169_s21 = smov %s888_s24  ;;  %20 = sbr.rel (!%p18_p10) target bundleno = 5 (0x5), region = 85 }
 0x29a   :  { %594 = vsyncpa [#allocation3], 1 }
 0x29b   :  { %596 = vsyncpa [#allocation3 + $0x1], 1 }
 0x29c   :  { %597 = vsyncpa [#allocation4], 1 }
 0x29d   :  { %599 = vsyncpa [#allocation4 + $0x1], 1 }

</bundles_post_ra>
